<compile_context>
chip_gen: v7x
topology: tpu7x:2x2x1
jax: 0.10.0
libtpu: 0.0.40
codegen_flags: <defaults>
</compile_context>

<pallas_src>
import functools

import jax
import jax.numpy as jnp
from jax.experimental import pallas as pl
from jax.experimental.pallas import tpu as pltpu


def _round_up(x, m):
    return (x + m - 1) // m * m


def _hardswish(x):
    # torch.nn.Hardswish: x * relu6(x + 3) / 6  (kept in f32 on the VPU)
    return x * jnp.clip(x + 3.0, 0.0, 6.0) * (1.0 / 6.0)


def mobilenetv3_head_kernel(x_ref, w1_ref, b1_ref, w2_ref, b2_ref, o_ref, *,
                            inv_hw):
    """One batch tile of the head.

    x_ref : (TILE_N, H*W, C_feat)     compute dtype (bf16), channels-last
    w1_ref: (C_feat, C_inner_pad)     compute dtype
    b1_ref: (1, C_inner_pad)          f32
    w2_ref: (C_inner_pad, C_out_pad)  compute dtype
    b2_ref: (1, C_out_pad)            f32
    o_ref : (TILE_N, C_out_pad)
    """
    # AdaptiveAvgPool2d((1,1)): reduce over the spatial (sublane) axis with f32
    # accumulation fused into the reduce; result is already (TILE_N, C) with C
    # on lanes, i.e. MXU-LHS layout.
    pooled = jnp.sum(x_ref[...], axis=1, dtype=jnp.float32) * inv_hw

    # conv1 (1x1, bias) == dense layer: bf16 operands, f32 accumulate on MXU.
    y = jnp.dot(pooled.astype(w1_ref.dtype), w1_ref[...],
                preferred_element_type=jnp.float32)
    y = y + b1_ref[...]
    y = _hardswish(y)

    # conv2 (1x1, bias) == dense layer.
    out = jnp.dot(y.astype(w2_ref.dtype), w2_ref[...],
                  preferred_element_type=jnp.float32)
    out = out + b2_ref[...]

    # flatten(1) is a no-op: spatial dims are already 1x1.
    o_ref[...] = out.astype(o_ref.dtype)


def _padded_vmem_bytes(shape, dtype):
    """VMEM footprint with (sublane, lane) granule padding."""
    itemsize = jnp.dtype(dtype).itemsize
    sub = {4: 8, 2: 16, 1: 32}.get(itemsize, 8)
    if len(shape) == 1:
        lead, rows, cols = 1, 1, shape[0]
    else:
        *lead_dims, rows, cols = shape
        lead = 1
        for d in lead_dims:
            lead *= int(d)
    return lead * _round_up(rows, sub) * _round_up(cols, 128) * itemsize


def _vmem_policy():
    """(budget_bytes, max_tile_n, vmem_limit_cap) per chip generation.

    128 MiB-VMEM parts (v5e/v6e) get a large budget and big batch tiles to
    amortize the ~0.35us per-grid-step overhead in this HBM-bound kernel; the
    64 MiB v7x gets a conservative budget and a <64 MiB limit cap so there is
    headroom for compiler-internal scratch.
    """
    physical = 64 << 20  # conservative default if the query is unavailable
    try:
        physical = int(pltpu.get_tpu_info().vmem_capacity_bytes)
    except Exception:
        pass
    if physical >= (96 << 20):           # v5e / v6e: 128 MiB per TensorCore
        return 96 << 20, 512, 100 << 20
    return 40 << 20, 128, 48 << 20       # v7x: 64 MiB per TensorCore


def _choose_tile_n(n, per_row_bytes, resident_bytes, budget, max_tile):
    avail = max(budget - resident_bytes, 4 << 20)
    cap = max(8, avail // (2 * per_row_bytes))       # 2x: double-buffered x
    if n >= 16:
        # Guarantee >= 2 grid steps so both v7x TensorCores get a batch tile.
        cap = min(cap, _round_up(-(-n // 2), 8))
    if n <= cap and n <= max_tile:
        return int(n)                                # single full-batch block
    tile = int(min(max_tile, cap))
    return max(8, (tile // 8) * 8)                   # partial blocks need %8 == 0


def mobilenetv3_head(x_nchw, w1, b1, w2, b2, *, compute_dtype=jnp.bfloat16):
    """x_nchw: (N, C_feat, H, W); w1: (C_feat, C_inner); b1: (C_inner,);
    w2: (C_inner, num_classes); b2: (num_classes,). Returns (N, num_classes)."""
    N, C, H, W = x_nchw.shape
    HW = H * W
    C_inner = w1.shape[1]
    num_classes = w2.shape[1]
    out_dtype = x_nchw.dtype

    c_inner_p = _round_up(C_inner, 128)
    c_out_p = _round_up(num_classes, 128)

    # Parameter prep (one-time per model load in practice): zero-pad
    # inner/class dims to lane-dense multiples of 128, cast weights to bf16;
    # biases stay f32.  Padding is exact (hardswish(0)=0, padded w2 rows zero).
    # TODO(synk): for small-batch inference, int8 (v5e/v6e) / fp8 (v7x) weights
    # would halve the dominant HBM bytes; kept bf16 here for simplicity.
    w1p = jnp.pad(w1.astype(jnp.float32),
                  ((0, 0), (0, c_inner_p - C_inner))).astype(compute_dtype)
    b1p = jnp.pad(b1.astype(jnp.float32), (0, c_inner_p - C_inner)).reshape(1, -1)
    w2p = jnp.pad(w2.astype(jnp.float32),
                  ((0, c_inner_p - C_inner), (0, c_out_p - num_classes))
                  ).astype(compute_dtype)
    b2p = jnp.pad(b2.astype(jnp.float32), (0, c_out_p - num_classes)).reshape(1, -1)

    # Channels-last for the kernel: NCHW -> (N, H*W, C) so the wide channel dim
    # sits on lanes (lane-dense DMA rows, no HW<128 lane padding, pooled result
    # already in MXU-LHS layout).
    # TODO(synk): if the upstream backbone can emit NHWC activations, pass them
    # through directly and drop this XLA transpose.
    x = jnp.transpose(x_nchw, (0, 2, 3, 1)).reshape(N, HW, C).astype(compute_dtype)

    budget, max_tile, limit_cap = _vmem_policy()
    resident = 2 * sum(_padded_vmem_bytes(a.shape, a.dtype)
                       for a in (w1p, b1p, w2p, b2p))  # 2x: Pallas double-buffers
    per_row = _padded_vmem_bytes((HW, C), compute_dtype)
    tile_n = _choose_tile_n(N, per_row, resident, budget, max_tile)
    grid = (pl.cdiv(N, tile_n),)

    out_tile = _padded_vmem_bytes((tile_n, c_out_p), out_dtype)
    interm = (_padded_vmem_bytes((tile_n, C), jnp.float32)
              + 2 * _padded_vmem_bytes((tile_n, c_inner_p), jnp.float32)
              + _padded_vmem_bytes((tile_n, c_out_p), jnp.float32))
    vmem_est = resident + 2 * tile_n * per_row + 2 * out_tile + interm + (2 << 20)
    vmem_limit = int(min(max(vmem_est + vmem_est // 2, 32 << 20), limit_cap))

    kernel = functools.partial(mobilenetv3_head_kernel, inv_hw=1.0 / HW)

    out_padded = pl.pallas_call(
        kernel,
        out_shape=jax.ShapeDtypeStruct((N, c_out_p), out_dtype),
        grid=grid,
        in_specs=[
            pl.BlockSpec((tile_n, HW, C), lambda i: (i, 0, 0)),
            # Weights/biases: constant index maps -> VMEM-resident across steps.
            pl.BlockSpec((C, c_inner_p), lambda i: (0, 0)),
            pl.BlockSpec((1, c_inner_p), lambda i: (0, 0)),
            pl.BlockSpec((c_inner_p, c_out_p), lambda i: (0, 0)),
            pl.BlockSpec((1, c_out_p), lambda i: (0, 0)),
        ],
        out_specs=pl.BlockSpec((tile_n, c_out_p), lambda i: (i, 0)),
        compiler_params=pltpu.CompilerParams(
            dimension_semantics=("parallel",),  # batch tiles -> both TCs on v7x
            vmem_limit_bytes=vmem_limit,
        ),
    )(x, w1p, b1p, w2p, b2p)

    return out_padded[:, :num_classes]


def init_params(key, feature_dims, inner_dims, num_classes, dtype=jnp.float32):
    """Kaiming-normal (fan_out, relu) for conv weights, zeros for biases.

    For a 1x1 conv, fan_out = out_channels, so std = sqrt(2 / out_channels).
    Weights are stored as (in, out) for direct use as matmul RHS.
    """
    k1, k2 = jax.random.split(key)
    std1 = (2.0 / inner_dims) ** 0.5
    std2 = (2.0 / num_classes) ** 0.5
    w1 = (jax.random.normal(k1, (feature_dims, inner_dims), dtype) * std1).astype(dtype)
    b1 = jnp.zeros((inner_dims,), dtype)
    w2 = (jax.random.normal(k2, (inner_dims, num_classes), dtype) * std2).astype(dtype)
    b2 = jnp.zeros((num_classes,), dtype)
    return w1, b1, w2, b2


if __name__ == "__main__":
    # Small shapes consistent with the module: feature -> inner -> classes.
    N, C_feat, H, W = 2, 32, 8, 8
    C_inner, num_classes = 64, 16

    key = jax.random.PRNGKey(0)
    kx, kp = jax.random.split(key)
    x = jax.random.normal(kx, (N, C_feat, H, W), jnp.float32)
    w1, b1, w2, b2 = init_params(kp, C_feat, C_inner, num_classes)

    out = mobilenetv3_head(x, w1, b1, w2, b2)
    out = jax.block_until_ready(out)

    # Reference in plain f32 JAX (same math as the PyTorch module).
    pooled = jnp.mean(x, axis=(2, 3))
    ref = pooled @ w1 + b1
    ref = ref * jnp.clip(ref + 3.0, 0.0, 6.0) / 6.0
    ref = ref @ w2 + b2

    assert out.shape == (N, num_classes)
    # bf16 compute path => loosened tolerance vs. the pure-f32 reference.
    assert jnp.allclose(out, ref, atol=2e-2, rtol=2e-2), float(
        jnp.max(jnp.abs(out - ref)))

    print("KERNEL_OK")
</pallas_src>

<mosaic_0001>
module attributes {stable_mosaic.version = 11 : i64} {
  func.func @mobilenetv3_head_kernel(%arg0: i32, %arg1: memref<2x64x32xbf16, #tpu.memory_space<vmem>>, %arg2: memref<32x128xbf16, #tpu.memory_space<vmem>>, %arg3: memref<1x128xf32, #tpu.memory_space<vmem>>, %arg4: memref<128x128xbf16, #tpu.memory_space<vmem>>, %arg5: memref<1x128xf32, #tpu.memory_space<vmem>>, %arg6: memref<2x128xf32, #tpu.memory_space<vmem>>) attributes {dimension_semantics = [#tpu.dimension_semantics<parallel>], iteration_bounds = array<i64: 1>, scalar_prefetch = 0 : i64, scratch_operands = 0 : i64, tpu.core_type = #tpu.core_type<tc>, window_params = [{transform_indices = @transform_0, window_bounds = array<i64: 2, 64, 32>}, {pipeline_mode = #tpu.pipeline_mode<synchronous>, transform_indices = @transform_1, window_bounds = array<i64: 32, 128>}, {pipeline_mode = #tpu.pipeline_mode<synchronous>, transform_indices = @transform_2, window_bounds = array<i64: 1, 128>}, {pipeline_mode = #tpu.pipeline_mode<synchronous>, transform_indices = @transform_3, window_bounds = array<i64: 128, 128>}, {pipeline_mode = #tpu.pipeline_mode<synchronous>, transform_indices = @transform_4, window_bounds = array<i64: 1, 128>}, {transform_indices = @transform_5, window_bounds = array<i64: 2, 128>}]} {
    %c0 = arith.constant 0 : index
    %c0_0 = arith.constant 0 : index
    %c0_1 = arith.constant 0 : index
    %0 = vector.load %arg1[%c0, %c0_0, %c0_1] : memref<2x64x32xbf16, #tpu.memory_space<vmem>>, vector<2x64x32xbf16>
    %1 = arith.extf %0 : vector<2x64x32xbf16> to vector<2x64x32xf32>
    %cst = arith.constant dense<0.000000e+00> : vector<2x32xf32>
    %2 = vector.multi_reduction <add>, %1, %cst [1] : vector<2x64x32xf32> to vector<2x32xf32>
    %cst_2 = arith.constant 1.562500e-02 : f32
    %3 = vector.broadcast %cst_2 : f32 to vector<2x32xf32>
    %4 = arith.mulf %2, %3 : vector<2x32xf32>
    %5 = arith.truncf %4 : vector<2x32xf32> to vector<2x32xbf16>
    %c0_3 = arith.constant 0 : index
    %c0_4 = arith.constant 0 : index
    %6 = vector.load %arg2[%c0_3, %c0_4] : memref<32x128xbf16, #tpu.memory_space<vmem>>, vector<32x128xbf16>
    %cst_5 = arith.constant dense<0.000000e+00> : vector<2x128xf32>
    %7 = tpu.matmul %5, %6, %cst_5 {dimension_numbers = #tpu.dot_dimension_numbers<[1], [0], [0], [1], [0, 0, 1, 1], [], []>} : vector<2x32xbf16>, vector<32x128xbf16>, vector<2x128xf32> -> vector<2x128xf32>
    %c0_6 = arith.constant 0 : index
    %c0_7 = arith.constant 0 : index
    %8 = vector.load %arg3[%c0_6, %c0_7] : memref<1x128xf32, #tpu.memory_space<vmem>>, vector<1x128xf32>
    %9 = vector.broadcast %8 : vector<1x128xf32> to vector<2x128xf32>
    %10 = arith.addf %7, %9 : vector<2x128xf32>
    %cst_8 = arith.constant 3.000000e+00 : f32
    %11 = vector.broadcast %cst_8 : f32 to vector<2x128xf32>
    %12 = arith.addf %10, %11 : vector<2x128xf32>
    %cst_9 = arith.constant 0.000000e+00 : f32
    %cst_10 = arith.constant 6.000000e+00 : f32
    %13 = vector.broadcast %cst_9 : f32 to vector<2x128xf32>
    %14 = arith.maximumf %13, %12 : vector<2x128xf32>
    %15 = vector.broadcast %cst_10 : f32 to vector<2x128xf32>
    %16 = arith.minimumf %15, %14 : vector<2x128xf32>
    %17 = arith.mulf %10, %16 : vector<2x128xf32>
    %cst_11 = arith.constant 0.166666672 : f32
    %18 = vector.broadcast %cst_11 : f32 to vector<2x128xf32>
    %19 = arith.mulf %17, %18 : vector<2x128xf32>
    %20 = arith.truncf %19 : vector<2x128xf32> to vector<2x128xbf16>
    %c0_12 = arith.constant 0 : index
    %c0_13 = arith.constant 0 : index
    %21 = vector.load %arg4[%c0_12, %c0_13] : memref<128x128xbf16, #tpu.memory_space<vmem>>, vector<128x128xbf16>
    %cst_14 = arith.constant dense<0.000000e+00> : vector<2x128xf32>
    %22 = tpu.matmul %20, %21, %cst_14 {dimension_numbers = #tpu.dot_dimension_numbers<[1], [0], [0], [1], [0, 0, 1, 1], [], []>} : vector<2x128xbf16>, vector<128x128xbf16>, vector<2x128xf32> -> vector<2x128xf32>
    %c0_15 = arith.constant 0 : index
    %c0_16 = arith.constant 0 : index
    %23 = vector.load %arg5[%c0_15, %c0_16] : memref<1x128xf32, #tpu.memory_space<vmem>>, vector<1x128xf32>
    %24 = vector.broadcast %23 : vector<1x128xf32> to vector<2x128xf32>
    %25 = arith.addf %22, %24 : vector<2x128xf32>
    %c0_17 = arith.constant 0 : index
    %c0_18 = arith.constant 0 : index
    %26 = vector.load %arg6[%c0_17, %c0_18] : memref<2x128xf32, #tpu.memory_space<vmem>>, vector<2x128xf32>
    tpu.vector_store %arg6[%c0_17, %c0_18], %25 {strides = array<i32>} : memref<2x128xf32, #tpu.memory_space<vmem>>, vector<2x128xf32>,
    return
  }
  func.func @transform_0(%arg0: i32) -> (i32, i32, i32) {
    %c0_i32 = arith.constant 0 : i32
    %c0_i32_0 = arith.constant 0 : i32
    %c0_i32_1 = arith.constant 0 : i32
    return %arg0, %c0_i32, %c0_i32_0 : i32, i32, i32
  }
  func.func @transform_1(%arg0: i32) -> (i32, i32) {
    %c0_i32 = arith.constant 0 : i32
    %c0_i32_0 = arith.constant 0 : i32
    %c0_i32_1 = arith.constant 0 : i32
    return %c0_i32, %c0_i32_0 : i32, i32
  }
  func.func @transform_2(%arg0: i32) -> (i32, i32) {
    %c0_i32 = arith.constant 0 : i32
    %c0_i32_0 = arith.constant 0 : i32
    %c0_i32_1 = arith.constant 0 : i32
    return %c0_i32, %c0_i32_0 : i32, i32
  }
  func.func @transform_3(%arg0: i32) -> (i32, i32) {
    %c0_i32 = arith.constant 0 : i32
    %c0_i32_0 = arith.constant 0 : i32
    %c0_i32_1 = arith.constant 0 : i32
    return %c0_i32, %c0_i32_0 : i32, i32
  }
  func.func @transform_4(%arg0: i32) -> (i32, i32) {
    %c0_i32 = arith.constant 0 : i32
    %c0_i32_0 = arith.constant 0 : i32
    %c0_i32_1 = arith.constant 0 : i32
    return %c0_i32, %c0_i32_0 : i32, i32
  }
  func.func @transform_5(%arg0: i32) -> (i32, i32) {
    %c0_i32 = arith.constant 0 : i32
    %c0_i32_0 = arith.constant 0 : i32
    return %arg0, %c0_i32 : i32, i32
  }
}

</mosaic_0001>

<bundles_post_ra>
// kernel: tpu_custom_call.1
= control target key start
LH: loop header
LB: loop body
LE: loop exit
PB: predicated region body
PF: predicated region fallthrough
CT: control target
= control target key end

     0   :  { %v435_v1 = vmov 0.0   ;;  %vm436_vm0 = vmmov 0   ;;  %vm54_vm1 = vcmask 261120   ;;  %s569_s0 = inlined_call_operand.vmem [shape: bf16[2,64,32], index: 0, kind: input, shape index: {}]   ;;  %s570_s1 = inlined_call_operand.vmem [shape: bf16[32,128], index: 1, kind: input, shape index: {}]   ;;  %s571_s2 = inlined_call_operand.vmem [shape: f32[1,128], index: 2, kind: input, shape index: {}]   ;;  %s572_s3 = inlined_call_operand.vmem [shape: bf16[128,128], index: 3, kind: input, shape index: {}]   ;;  %s573_s4 = inlined_call_operand.vmem [shape: f32[1,128], index: 4, kind: input, shape index: {}]   ;;  %s574_s5 = inlined_call_operand.hbm [shape: f32[2,128], index: 5, kind: output, shape index: {}]  }
   0x1   :  { %v401_v0 = vld [vmem:[%s570_s1] sm:$0xff]   ;;  %370 = vmatprep.subr.bf16.mxu0 %v435_v1  ;;  %378 = vmatprep.subr.bf16.mxu1 %v435_v1  ;;  %v402_v2 = vld [vmem:[%s570_s1 + $0x8] sm:$0xff]   ;;  %v352_v8 = vld [vmem:[%s569_s0 + $0x10] sm:$0xff]  }
   0x2   :  { %371 = vmatpush3.bf16.msra.mxu0 %v401_v0  ;;  %374 = vmatprep.mubr.msk.bf16.mxu0 %vm436_vm0, %v435_v1  ;;  %v320_v3 = vld [vmem:[%s569_s0] sm:$0xff]   ;;  %v351_v4 = vld [vmem:[%s569_s0 + $0x8] sm:$0xff]   ;;  %v356_v11 = vld [vmem:[%s569_s0 + $0x30] sm:$0xff]   ;;  %v329_v17 = vunpack.c.l.bf16 %v352_v8  ;;  %v330_v18 = vunpack.c.h.bf16 %v352_v8 }
   0x3   :  { %372 = vmatprep.subr.bf16.mxu0 %v435_v1  ;;  %v321_v5 = vunpack.c.l.bf16 %v320_v3  ;;  %v322_v6 = vunpack.c.h.bf16 %v320_v3  ;;  %v325_v7 = vunpack.c.l.bf16 %v351_v4  ;;  %v354_v9 = vld [vmem:[%s569_s0 + $0x20] sm:$0xff]   ;;  %v355_v10 = vld [vmem:[%s569_s0 + $0x28] sm:$0xff]   ;;  %394 = vmatprep.mubr.msk.bf16.mxu1 %vm436_vm0, %v435_v1  ;;  %v326_v12 = vunpack.c.h.bf16 %v351_v4  ;;  %v353_v19 = vld [vmem:[%s569_s0 + $0x18] sm:$0xff]  }
   0x4   :  { %v337_v13 = vunpack.c.l.bf16 %v354_v9  ;;  %v338_v14 = vunpack.c.h.bf16 %v354_v9  ;;  %v341_v15 = vunpack.c.l.bf16 %v355_v10  ;;  %v403_v16 = vld [vmem:[%s572_s3] sm:$0xff]   ;;  %v342_v20 = vunpack.c.h.bf16 %v355_v10  ;;  %v404_v25 = vld [vmem:[%s572_s3 + $0x8] sm:$0xff]   ;;  %v357_v32 = vld [vmem:[%s569_s0 + $0x38] sm:$0xff]  }
   0x5   :  { %v345_v21 = vunpack.c.l.bf16 %v356_v11  ;;  %v55_v22 = vsel %vm54_vm1, %v321_v5, 0.0  ;;  %v56_v23 = vsel %vm54_vm1, %v322_v6, 0.0  ;;  %v58_v24 = vsel %vm54_vm1, %v325_v7, 0.0  ;;  %379 = vmatpush3.bf16.msra.mxu1 %v403_v16  ;;  %v405_v40 = vld [vmem:[%s572_s3 + $0x10] sm:$0xff]  }
   0x6   :  { %373 = vmatpush3.bf16.msra.mxu0 %v402_v2  ;;  %v57_v26 = vadd.f32 %v56_v23, %v55_v22  ;;  %380 = vmatprep.subr.bf16.mxu1 %v435_v1  ;;  %v60_v27 = vsel %vm54_vm1, %v326_v12, 0.0  ;;  %v76_v28 = vsel %vm54_vm1, %v337_v13, 0.0  ;;  %v77_v29 = vsel %vm54_vm1, %v338_v14, 0.0 }
   0x7   :  { %v79_v30 = vsel %vm54_vm1, %v341_v15, 0.0  ;;  %v333_v31 = vunpack.c.l.bf16 %v353_v19  ;;  %v62_v34 = vsel %vm54_vm1, %v329_v17, 0.0  ;;  %v78_v35 = vadd.f32 %v77_v29, %v76_v28 }
   0x8   :  { %v59_v33 = vadd.f32 %v58_v24, %v57_v26  ;;  %v346_v36 = vunpack.c.h.bf16 %v356_v11  ;;  %v64_v37 = vsel %vm54_vm1, %v330_v18, 0.0  ;;  %v81_v38 = vsel %vm54_vm1, %v342_v20, 0.0 }
   0x9   :  { %v83_v39 = vsel %vm54_vm1, %v345_v21, 0.0  ;;  %381 = vmatpush3.bf16.msra.mxu1 %v404_v25  ;;  %v80_v42 = vadd.f32 %v79_v30, %v78_v35  ;;  %v334_v43 = vunpack.c.h.bf16 %v353_v19  ;;  %v349_v44 = vunpack.c.l.bf16 %v357_v32 }
   0xa   :  { %v61_v41 = vadd.f32 %v60_v27, %v59_v33  ;;  %382 = vmatprep.subr.bf16.mxu1 %v435_v1 }
   0xb   :  { %v82_v46 = vadd.f32 %v81_v38, %v80_v42 }
   0xc   :  { %v63_v45 = vadd.f32 %v62_v34, %v61_v41 }
   0xd   :  { %10 = vsyncpa [#allocation3], 0  ;;  %v350_v47 = vunpack.c.h.bf16 %v357_v32  ;;  %v66_v48 = vsel %vm54_vm1, %v333_v31, 0.0  ;;  %v85_v49 = vsel %vm54_vm1, %v346_v36, 0.0  ;;  %383 = vmatpush3.bf16.msra.mxu1 %v405_v40  ;;  %v406_v50 = vld [vmem:[%s572_s3 + $0x18] sm:$0xff]   ;;  %v84_v52 = vadd.f32 %v83_v39, %v82_v46  ;;  %v407_v18 = vld [vmem:[%s572_s3 + $0x20] sm:$0xff]  }
   0xe   :  { %v65_v51 = vadd.f32 %v64_v37, %v63_v45  ;;  %384 = vmatprep.subr.bf16.mxu1 %v435_v1  ;;  %v68_v53 = vsel %vm54_vm1, %v334_v43, 0.0  ;;  %v87_v54 = vsel %vm54_vm1, %v349_v44, 0.0  ;;  %vm116_vm2 = vcmask 1041409   ;;  %v408_v19 = vld [vmem:[%s572_s3 + $0x28] sm:$0xff]   ;;  %v409_v20 = vld [vmem:[%s572_s3 + $0x30] sm:$0xff]   ;;  %v410_v21 = vld [vmem:[%s572_s3 + $0x38] sm:$0xff]  }
   0xf   :  { %v86_v56 = vadd.f32 %v85_v49, %v84_v52  ;;  %v89_v57 = vsel %vm54_vm1, %v350_v47, 0.0  ;;  %v306_v22 = vld [vmem:[%s571_s2] ss:$0 sm:$0xff]  ;;  %s437_s3 = smov [#allocation2]  }
  0x10   :  { %v67_v55 = vadd.f32 %v66_v48, %v65_v51  ;;  %v310_v33 = vld [vmem:[%s573_s4] ss:$0 sm:$0xff]  ;;  %s298_s30 = sshll.u32 %s437_s3, 4  ;;  %s299_s30 = int_to_ptr.vmem [resolvable:$true] %s298_s30 }
  0x11   :  { %385 = vmatpush3.bf16.msra.mxu1 %v406_v50  ;;  %v88_v59 = vadd.f32 %v87_v54, %v86_v56  ;;  %s411_s2 = scalar_lea.vmem %s299_s30, 32  ;;  %p416_p1 = scmp.lt.s32.totalorder %s299_s30, %s299_s30 }
  0x12   :  { %v69_v58 = vadd.f32 %v68_v53, %v67_v55  ;;  %386 = vmatprep.subr.bf16.mxu1 %v435_v1  ;;  %p412_p0 = scmp.ne.s32.totalorder %s299_s30, %s411_s2  ;;  %p417_p2 = scmp.lt.s32.totalorder %s411_s2, %s411_s2 }
  0x13   :  { %v90_v61 = vadd.f32 %v89_v57, %v88_v59 }
  0x14   :  { %v70_v60 = vrot.slane %v69_v58, 4  ;;  %p418_p3 = por %p417_p2, %p416_p1 }
  0x15   :  { %v91_v63 = vrot.slane %v90_v61, 4  ;;  %387 = vmatpush3.bf16.msra.mxu1 %v407_v18 }
  0x16   :  { %v71_v62 = vadd.f32 %v70_v60, %v69_v58  ;;  %388 = vmatprep.subr.bf16.mxu1 %v435_v1  ;;  %p419_p4 = pnand %p418_p3, %p412_p0 }
  0x17   :  { %v92_v2 = vadd.f32 %v91_v63, %v90_v61 }
  0x18   :  { %v72_v0 = vrot.slane %v71_v62, 2 }
  0x19   :  { %v93_v4 = vrot.slane %v92_v2, 2  ;;  %389 = vmatpush3.bf16.msra.mxu1 %v408_v19 }
  0x1a   :  { %v73_v3 = vadd.f32 %v72_v0, %v71_v62  ;;  %390 = vmatprep.subr.bf16.mxu1 %v435_v1 }
  0x1b   :  { %v94_v6 = vadd.f32 %v93_v4, %v92_v2 }
  0x1c   :  { %v74_v5 = vrot.slane %v73_v3, 1 }
  0x1d   :  { %v95_v8 = vrot.slane %v94_v6, 1  ;;  %391 = vmatpush3.bf16.msra.mxu1 %v409_v20 }
  0x1e   :  { %v75_v7 = vadd.f32 %v74_v5, %v73_v3  ;;  %392 = vmatprep.subr.bf16.mxu1 %v435_v1 }
  0x1f   :  { %v96_v9 = vadd.f32 %v95_v8, %v94_v6 }
  0x20   :  { %v97_v10 = vmul.f32 0.015625, %v75_v7 }
  0x21   :  { %v98_v11 = vmul.f32 0.015625, %v96_v9  ;;  %393 = vmatpush3.bf16.msra.mxu1 %v410_v21 }
  0x22   :  { %v99_v12 = vpack.c.bf16 %v97_v10, %v97_v10 }
  0x23   :  { %v100_v13 = vpack.c.bf16 %v98_v11, %v98_v11 }
  0x24   :  { %v114_v14 = vunpack.c.l.b16 %v99_v12 }
  0x25   :  { %v115_v15 = vunpack.c.l.b16 %v100_v13 }
  0x27   :  { %v117_v16 = vsel %vm116_vm2, %v115_v15, %v114_v14 }
  0x28   :  { %v118_v17 = vpack.c.b16 %v117_v16, %v117_v16 }
  0x2a   :  { %375 = vmatmul.mubr.msk.bf16.vlgmr.msra.gmra.mrb[0].mxu0 %vm54_vm1, %v118_v17 }
  0xfd   :  { %v168_v23 = vpop.f32.mrb[0].mxu0 }
  0xfe   :  { %v169_v24 = vadd.f32 %v306_v22, %v168_v23  ;;  %v376_v25 = vpop.f32.mrb[1].mxu0 }
  0xff   :  { %v171_v26 = vpop.f32.mrb[2].mxu0 }
 0x100   :  { %v174_v27 = vadd.f32 3.0, %v169_v24  ;;  %v377_v28 = vpop.f32.mrb[3].mxu0 }
 0x102   :  { %v175_v29 = vmax.f32 %v174_v27, 0.0 }
 0x104   :  { %v176_v30 = vmin.f32 %v175_v29, 6.0 }
 0x106   :  { %v177_v31 = vmul.f32 %v176_v30, %v169_v24 }
 0x108   :  { %v178_v32 = vmul.f32 0.16666667, %v177_v31 }
 0x10a   :  { %v179_v1 = vpack.c.bf16 %v178_v32, %v178_v32 }
 0x10c   :  { %395 = vmatmul.mubr.bf16.vlgmr.msra.gmra.mrb[0].mxu1 %v179_v1 }
 0x1df   :  { %v285_v34 = vpop.f32.mrb[0].mxu1 }
 0x1e0   :  { %v286_v35 = vadd.f32 %v310_v33, %v285_v34  ;;  %v396_v36 = vpop.f32.mrb[1].mxu1 }
 0x1e1   :  { %v288_v37 = vpop.f32.mrb[2].mxu1 }
 0x1e2   :  { %291 = vst [vmem:[#allocation2] sm:$0x3] %v286_v35  ;;  %v397_v38 = vpop.f32.mrb[3].mxu1 }
 0x1e3   :  { %422 = shalt.err (!%p419_p4)
}
 0x1e4   :  { %s423_s4 = scalar_lea.hbm %s574_s5, 32 }
 0x1e5   :  { %p424_p5 = scmp.ne.s32.totalorder %s574_s5, %s423_s4  ;;  %p427_p6 = scmp.lt.u32.totalorder %s423_s4, %s574_s5 }
 0x1e7   :  { %p429_p7 = pnand %p427_p6, %p424_p5 }
 0x1e9   :  { %432 = shalt.err (!%p429_p7)
}
 0x1ea   :  { %301 = dma.vmem_to_hbm [thread:$0]  %s299_s30, 32, %s574_s5, [#allocation3]  }
 0x1eb   :  { %433 = dma.done.wait [#allocation3], 32  }
 0x1ec   :  { %434 = vsyncadd [#allocation3], 4294967264 }
 0x1ed   :  { %305 = vsyncpa [#allocation3], 1 }

</bundles_post_ra>
